<compile_context>
chip_gen: v7x
topology: tpu7x:2x2x1
jax: 0.10.0
libtpu: 0.0.40
codegen_flags: <defaults>
</compile_context>

<pallas_src>
import functools

import jax
import jax.numpy as jnp
from jax.experimental import pallas as pl
from jax.experimental.pallas import tpu as pltpu


def _pixel_unshuffle_kernel(q_ref, x_ref, o_ref, *, r, w, wo, cw, precision):
    # q_ref: (r*cw, r*cw)   column de-interleave one-hot (constant index_map -> resident)
    # x_ref: (cb, th, r*w)  th row-groups for cb (batch,channel) pairs; each row-group
    #                       packs r consecutive image rows back-to-back along lanes.
    # o_ref: (cb, r*r, th, wo)
    cb, th, _ = x_ref.shape
    lhs = x_ref[...].reshape(cb * th, r * w)      # merge (cb, th) -> tall matmul rows
    q = q_ref[...]
    nk = wo // cw
    for i in range(r):                            # which packed image row in a row-group
        for k in range(nk):                       # output column chunk (cw lanes)
            start = i * w + k * cw * r            # static; 128-aligned when w % 128 == 0
            win = lhs[:, start:start + cw * r]                         # (cb*th, r*cw)
            y = jnp.dot(win, q, preferred_element_type=jnp.float32,
                        precision=precision)                           # (cb*th, r*cw)
            y = y.astype(o_ref.dtype).reshape(cb, th, r * cw)
            for j in range(r):
                o_ref[:, i * r + j, :, k * cw:(k + 1) * cw] = \
                    y[:, :, j * cw:(j + 1) * cw]


def pixel_unshuffle(x, downscale_factor):
    r = int(downscale_factor)
    B, C, H, W = x.shape
    if H % r or W % r:
        raise ValueError("spatial dims must be divisible by downscale_factor")
    if not jnp.issubdtype(x.dtype, jnp.floating):
        # TODO(synk): integer dtypes need a copy-only (non-MXU) path.
        raise NotImplementedError("Pallas pixel_unshuffle supports float dtypes only")

    Ho, Wo = H // r, W // r
    itemsize = jnp.dtype(x.dtype).itemsize
    G = B * C

    # Column-chunk width: exploit block-diagonal structure of the one-hot while
    # keeping the in-kernel unroll bounded.
    if Wo % 128 == 0:
        cw = 128
        while Wo // cw > 8 and Wo % (cw * 2) == 0:
            cw *= 2
    else:
        cw = Wo

    # Generation-aware slab budget (bigger on 128 MiB-VMEM v5e/v6e, smaller on v7x).
    try:
        vmem_cap = int(getattr(pltpu.get_tpu_info(), "vmem_capacity_bytes", 64 << 20))
    except Exception:
        vmem_cap = 64 << 20
    budget = max(1 << 20, min(8 << 20, vmem_cap // 16))

    # Ho tiling (th) then channel-group blocking (cb), largest blocks that fit.
    row_bytes = r * W * itemsize                      # one (channel, ho) row-group
    fitting = [d for d in range(Ho, 0, -1) if Ho % d == 0 and d * row_bytes <= budget]
    if fitting and fitting[0] == Ho:
        th = Ho
    else:
        pref = [d for d in fitting if d % 8 == 0]
        th = pref[0] if pref else (fitting[0] if fitting else 1)

    unit = th * row_bytes
    cb = 1
    if th == Ho:
        for d in range(G, 0, -1):
            if G % d == 0 and d * unit <= budget:
                cb = d
                break
        # keep >= 2 grid steps when everything fits in one block (pipelining / megacore)
        if cb == G and G > 1 and Ho // th == 1:
            for d in range(G // 2, 0, -1):
                if G % d == 0:
                    cb = d
                    break
    block_bytes = cb * unit

    # One-hot de-interleave matrix: q[u, j*cw + v] = 1 iff u == v*r + j.
    n = jnp.arange(r * cw)
    src = (n % cw) * r + (n // cw)
    q = (jnp.arange(r * cw)[:, None] == src[None, :]).astype(x.dtype)
    q_bytes = (r * cw) * (r * cw) * itemsize

    # Double-buffered in+out blocks, a possible reshape copy, q, plus headroom.
    vmem_limit = 5 * block_bytes + 2 * q_bytes + (4 << 20)
    vmem_limit = int(min(max(vmem_limit, 16 << 20), min(96 << 20, (vmem_cap * 3) // 4)))

    precision = jax.lax.Precision.HIGHEST if x.dtype == jnp.float32 else None
    kernel = functools.partial(_pixel_unshuffle_kernel,
                               r=r, w=W, wo=Wo, cw=cw, precision=precision)

    xr = x.reshape(G, Ho, r * W)                      # bitcast reshape (free in XLA)
    out5 = pl.pallas_call(
        kernel,
        out_shape=jax.ShapeDtypeStruct((G, r * r, Ho, Wo), x.dtype),
        grid=(G // cb, Ho // th),
        in_specs=[
            pl.BlockSpec((r * cw, r * cw), lambda g, t: (0, 0)),   # resident constant
            pl.BlockSpec((cb, th, r * W), lambda g, t: (g, t, 0)),
        ],
        out_specs=pl.BlockSpec((cb, r * r, th, Wo), lambda g, t: (g, 0, t, 0)),
        compiler_params=pltpu.CompilerParams(
            dimension_semantics=("parallel", "parallel"),
            vmem_limit_bytes=vmem_limit),
    )(q, xr)
    return out5.reshape(B, C * r * r, Ho, Wo)         # bitcast reshape (free in XLA)


def _ref_pixel_unshuffle(x, r):
    # Pure-JAX reference matching torch.nn.functional.pixel_unshuffle.
    B, C, H, W = x.shape
    y = x.reshape(B, C, H // r, r, W // r, r)
    y = jnp.transpose(y, (0, 1, 3, 5, 2, 4))
    return y.reshape(B, C * r * r, H // r, W // r)


if __name__ == "__main__":
    key = jax.random.PRNGKey(0)
    for (B, C, H, W, r) in [(2, 4, 16, 16, 2), (1, 2, 32, 32, 4)]:
        key, sub = jax.random.split(key)
        x = jax.random.normal(sub, (B, C, H, W), dtype=jnp.float32)

        out = jax.block_until_ready(pixel_unshuffle(x, r))
        ref = _ref_pixel_unshuffle(x, r)

        assert out.shape == (B, C * r * r, H // r, W // r), out.shape
        assert out.dtype == x.dtype
        assert jnp.allclose(out, ref), f"mismatch vs reference for {(B, C, H, W, r)}"
    print("KERNEL_OK")
</pallas_src>

<mosaic_0001>
module attributes {stable_mosaic.version = 11 : i64} {
  func.func @_pixel_unshuffle_kernel(%arg0: i32, %arg1: i32, %arg2: memref<16x16xf32, #tpu.memory_space<vmem>>, %arg3: memref<4x8x32xf32, #tpu.memory_space<vmem>>, %arg4: memref<4x4x8x8xf32, #tpu.memory_space<vmem>>) attributes {dimension_semantics = [#tpu.dimension_semantics<parallel>, #tpu.dimension_semantics<parallel>], iteration_bounds = array<i64: 2, 1>, scalar_prefetch = 0 : i64, scratch_operands = 0 : i64, tpu.core_type = #tpu.core_type<tc>, window_params = [{pipeline_mode = #tpu.pipeline_mode<synchronous>, transform_indices = @transform_0, window_bounds = array<i64: 16, 16>}, {transform_indices = @transform_1, window_bounds = array<i64: 4, 8, 32>}, {transform_indices = @transform_2, window_bounds = array<i64: 4, 4, 8, 8>}]} {
    %c0 = arith.constant 0 : index
    %c0_0 = arith.constant 0 : index
    %c0_1 = arith.constant 0 : index
    %0 = vector.load %arg3[%c0, %c0_0, %c0_1] : memref<4x8x32xf32, #tpu.memory_space<vmem>>, vector<4x8x32xf32>
    %1 = vector.shape_cast %0 : vector<4x8x32xf32> to vector<32x32xf32>
    %c0_2 = arith.constant 0 : index
    %c0_3 = arith.constant 0 : index
    %2 = vector.load %arg2[%c0_2, %c0_3] : memref<16x16xf32, #tpu.memory_space<vmem>>, vector<16x16xf32>
    %3 = vector.extract_strided_slice %1 {offsets = [0, 0], sizes = [32, 16], strides = [1, 1]} : vector<32x32xf32> to vector<32x16xf32>
    %cst = arith.constant dense<0.000000e+00> : vector<32x16xf32>
    %4 = tpu.matmul %3, %2, %cst {dimension_numbers = #tpu.dot_dimension_numbers<[1], [0], [0], [1], [0, 0, 1, 1], [], []>, precision = #tpu.contract_precision<fp32>} : vector<32x16xf32>, vector<16x16xf32>, vector<32x16xf32> -> vector<32x16xf32>
    %5 = vector.shape_cast %4 : vector<32x16xf32> to vector<4x8x16xf32>
    %6 = vector.extract_strided_slice %5 {offsets = [0, 0, 0], sizes = [4, 8, 8], strides = [1, 1, 1]} : vector<4x8x16xf32> to vector<4x8x8xf32>
    %c0_4 = arith.constant 0 : index
    %c0_5 = arith.constant 0 : index
    %c0_6 = arith.constant 0 : index
    %c0_7 = arith.constant 0 : index
    %7 = vector.load %arg4[%c0_4, %c0_5, %c0_6, %c0_7] : memref<4x4x8x8xf32, #tpu.memory_space<vmem>>, vector<4x1x8x8xf32>
    %8 = vector.shape_cast %7 : vector<4x1x8x8xf32> to vector<4x8x8xf32>
    %9 = vector.shape_cast %6 : vector<4x8x8xf32> to vector<4x1x8x8xf32>
    tpu.vector_store %arg4[%c0_4, %c0_5, %c0_6, %c0_7], %9 {strides = array<i32>} : memref<4x4x8x8xf32, #tpu.memory_space<vmem>>, vector<4x1x8x8xf32>,
    %10 = vector.extract_strided_slice %5 {offsets = [0, 0, 8], sizes = [4, 8, 8], strides = [1, 1, 1]} : vector<4x8x16xf32> to vector<4x8x8xf32>
    %c0_8 = arith.constant 0 : index
    %c1 = arith.constant 1 : index
    %c0_9 = arith.constant 0 : index
    %c0_10 = arith.constant 0 : index
    %11 = vector.load %arg4[%c0_8, %c1, %c0_9, %c0_10] : memref<4x4x8x8xf32, #tpu.memory_space<vmem>>, vector<4x1x8x8xf32>
    %12 = vector.shape_cast %11 : vector<4x1x8x8xf32> to vector<4x8x8xf32>
    %13 = vector.shape_cast %10 : vector<4x8x8xf32> to vector<4x1x8x8xf32>
    tpu.vector_store %arg4[%c0_8, %c1, %c0_9, %c0_10], %13 {strides = array<i32>} : memref<4x4x8x8xf32, #tpu.memory_space<vmem>>, vector<4x1x8x8xf32>,
    %14 = vector.extract_strided_slice %1 {offsets = [0, 16], sizes = [32, 16], strides = [1, 1]} : vector<32x32xf32> to vector<32x16xf32>
    %cst_11 = arith.constant dense<0.000000e+00> : vector<32x16xf32>
    %15 = tpu.matmul %14, %2, %cst_11 {dimension_numbers = #tpu.dot_dimension_numbers<[1], [0], [0], [1], [0, 0, 1, 1], [], []>, precision = #tpu.contract_precision<fp32>} : vector<32x16xf32>, vector<16x16xf32>, vector<32x16xf32> -> vector<32x16xf32>
    %16 = vector.shape_cast %15 : vector<32x16xf32> to vector<4x8x16xf32>
    %17 = vector.extract_strided_slice %16 {offsets = [0, 0, 0], sizes = [4, 8, 8], strides = [1, 1, 1]} : vector<4x8x16xf32> to vector<4x8x8xf32>
    %c0_12 = arith.constant 0 : index
    %c2 = arith.constant 2 : index
    %c0_13 = arith.constant 0 : index
    %c0_14 = arith.constant 0 : index
    %18 = vector.load %arg4[%c0_12, %c2, %c0_13, %c0_14] : memref<4x4x8x8xf32, #tpu.memory_space<vmem>>, vector<4x1x8x8xf32>
    %19 = vector.shape_cast %18 : vector<4x1x8x8xf32> to vector<4x8x8xf32>
    %20 = vector.shape_cast %17 : vector<4x8x8xf32> to vector<4x1x8x8xf32>
    tpu.vector_store %arg4[%c0_12, %c2, %c0_13, %c0_14], %20 {strides = array<i32>} : memref<4x4x8x8xf32, #tpu.memory_space<vmem>>, vector<4x1x8x8xf32>,
    %21 = vector.extract_strided_slice %16 {offsets = [0, 0, 8], sizes = [4, 8, 8], strides = [1, 1, 1]} : vector<4x8x16xf32> to vector<4x8x8xf32>
    %c0_15 = arith.constant 0 : index
    %c3 = arith.constant 3 : index
    %c0_16 = arith.constant 0 : index
    %c0_17 = arith.constant 0 : index
    %22 = vector.load %arg4[%c0_15, %c3, %c0_16, %c0_17] : memref<4x4x8x8xf32, #tpu.memory_space<vmem>>, vector<4x1x8x8xf32>
    %23 = vector.shape_cast %22 : vector<4x1x8x8xf32> to vector<4x8x8xf32>
    %24 = vector.shape_cast %21 : vector<4x8x8xf32> to vector<4x1x8x8xf32>
    tpu.vector_store %arg4[%c0_15, %c3, %c0_16, %c0_17], %24 {strides = array<i32>} : memref<4x4x8x8xf32, #tpu.memory_space<vmem>>, vector<4x1x8x8xf32>,
    return
  }
  func.func @transform_0(%arg0: i32, %arg1: i32) -> (i32, i32) {
    %c0_i32 = arith.constant 0 : i32
    %c0_i32_0 = arith.constant 0 : i32
    %c0_i32_1 = arith.constant 0 : i32
    return %c0_i32, %c0_i32_0 : i32, i32
  }
  func.func @transform_1(%arg0: i32, %arg1: i32) -> (i32, i32, i32) {
    %c0_i32 = arith.constant 0 : i32
    %c0_i32_0 = arith.constant 0 : i32
    return %arg0, %arg1, %c0_i32 : i32, i32, i32
  }
  func.func @transform_2(%arg0: i32, %arg1: i32) -> (i32, i32, i32, i32) {
    %c0_i32 = arith.constant 0 : i32
    %c0_i32_0 = arith.constant 0 : i32
    %c0_i32_1 = arith.constant 0 : i32
    return %arg0, %c0_i32, %arg1, %c0_i32_0 : i32, i32, i32, i32
  }
}

</mosaic_0001>

<bundles_post_ra>
// kernel: tpu_custom_call.1
= control target key start
LH: loop header
LB: loop body
LE: loop exit
PB: predicated region body
PF: predicated region fallthrough
CT: control target
= control target key end

     0   :  { %7 = vsyncpa [#allocation3], 0  ;;  %s2459_s0 = inlined_call_operand.hbm [shape: f32[16,16], index: 0, kind: input, shape index: {}]   ;;  %s2460_s1 = inlined_call_operand.hbm [shape: f32[8,8,32], index: 1, kind: input, shape index: {}]   ;;  %s2461_s2 = inlined_call_operand.hbm [shape: f32[8,4,8,8], index: 2, kind: output, shape index: {}]  }
   0x1   :  { %8 = vsyncpa [#allocation6], 0 }
   0x2   :  { %10 = vsyncpa [#allocation6 + $0x1], 0 }
   0x3   :  { %11 = vsyncpa [#allocation4], 0 }
   0x4   :  { %13 = vsyncpa [#allocation4 + $0x1], 0  ;;  %s2134_s9 = smov 0   ;;  %s2136_s10 = smov 0  }
   0x5   :  { %s2138_s11 = smov 0   ;;  %s2140_s12 = smov 0  }
   0x6   :  { %s2142_s13 = smov 0   ;;  %s2144_s14 = smov 0  }
   0x7 LB: > { %s1572_s15 = sadd.s32 4294967295, %s2108_s14   ;;  %s1573_s16 = sadd.s32 4294967294, %s2108_s14   ;;  %s2108_s14 = sphi %s2144_s14, %s19_s14   ;;  %s2104_s13 = sphi %s2142_s13, %s2485_s13   ;;  %s2100_s12 = sphi %s2140_s12, %s2484_s12   ;;  %s2096_s11 = sphi %s2138_s11, %s2483_s11   ;;  %s2092_s10 = sphi %s2136_s10, %s2482_s10   ;;  %s2088_s9 = sphi %s2134_s9, %s2481_s9  }
   0x8   : > { %p74_p0 = scmp.ne.s32.totalorder %s2092_s10, %s2088_s9  ;;  %p2168_p1 = scmp.eq.s32.totalorder %s1572_s15, 0 }
   0x9   : > { %p2172_p2 = scmp.eq.s32.totalorder %s1572_s15, 1  ;;  %p106_p3 = scmp.eq.s32.totalorder %s1573_s16, 1 }
   0xa   : > { %s2466_s17 = scalar_select %p2168_p1, 1, 0 }
   0xb   : > { %s2467_s18 = scalar_select %p2172_p2, 1, 0 }
   0xc   : > { %p2178_p4 = por %p2168_p1, %p74_p0  ;;  %p1574_p5 = scmp.ge.s32.totalorder %s2108_s14, 1 }
   0xd   : > { %p2183_p6 = por %p106_p3, %p74_p0  ;;  %p113_p7 = scmp.lt.s32.totalorder %s2108_s14, 3 }
   0xe   : > { %s2468_s19 = scalar_select %p2178_p4, 1, 0 }
   0xf   : > { %s2469_s20 = scalar_select %p2183_p6, 1, 0 }
  0x10   : > { %p2188_p8 = pnand %p1574_p5, %p113_p7  ;;  %s2110_s22 = smov [#allocation2]  }
  0x11   : > { %s125_s23 = sshll.u32 %s2110_s22, 4  ;;  %s31_s25 = sadd.s32 1, %s2104_s13  ;;  %s126_s23 = int_to_ptr.vmem [resolvable:$true] %s125_s23 }
  0x12   : > { %s2470_s21 = scalar_select %p2188_p8, 1, 0 }
  0x13   : > { %p1893_p9 = pneg %p2188_p8  ;;  %s1964_s28 = scalar_lea.hbm %s2459_s0, 256 }
  0x14   : > { %p1965_p12 = scmp.ne.s32.totalorder %s2459_s0, %s1964_s28  ;;  %p1971_p5 = scmp.lt.u32.totalorder %s1964_s28, %s2459_s0 }
  0x15   : > { %p2197_p11 = pnand %p1893_p9, %p2168_p1 }
  0x17   : > { %p1966_p13 = pneg %p2197_p11 }
  0x19   : > { %p1967_p0 = pnand %p1966_p13, %p1965_p12 }
  0x1b   : > { %p1968_p3 = pneg %p1967_p0 }
  0x1d   : > { %p1973_p7 = pnand %p1971_p5, %p1968_p3 }
  0x1f   : > { %1976 = shalt.err (!%p1973_p7)
}
  0x20   : > { %s1977_s5 = scalar_lea.vmem %s126_s23, 256  ;;  %p1985_p4 = scmp.lt.s32.totalorder %s126_s23, %s126_s23 }
  0x21   : > { %p1978_p9 = scmp.ne.s32.totalorder %s126_s23, %s1977_s5  ;;  %p1986_p1 = scmp.lt.s32.totalorder %s1977_s5, %s1977_s5 }
  0x23   : > { %p1980_p10 = pnand %p1978_p9, %p1966_p13  ;;  %p1987_p8 = por %p1986_p1, %p1985_p4 }
  0x25   : > { %p1981_p6 = pneg %p1980_p10 }
  0x27   : > { %p1988_p2 = pnand %p1987_p8, %p1981_p6 }
  0x29   : > { %1991 = shalt.err (!%p1988_p2)
}
  0x2a   : > { %s2111_s6 = smov 128   ;;  %s2112_s7 = smov 8  }
  0x2b   : > { %1896 = dma.hbm_to_vmem [thread:$0]  (!%p2197_p11), %s2459_s0, 256, %s126_s23, [#allocation3], %s2111_s6, %s2111_s6, %s2112_s7  }
  0x2c   : > { %p33_p1 = scmp.ge.s32.totalorder %s31_s25, 2  ;;  %s61_s16 = sadd.s32 1, %s2096_s11 }
  0x2d   : > { %p68_p2 = scmp.ne.s32.totalorder %s2096_s11, %s2092_s10  ;;  %p69_p4 = scmp.eq.s32.totalorder %s2108_s14, 0 }
  0x2e   : > { %s2487_s25 = smov (%p33_p1, %s31_s25), 0  ;;  %p2473_p8 = scmp.ne.s32.totalorder %s2467_s18, 0 }
  0x2f   : > { %p2227_p6 = por %p69_p4, %p68_p2  ;;  %s56_s26 = ssub.s32 %s2104_s13, %s2487_s25 }
  0x30   : > { %p2233_p10 = por %p2473_p8, %p68_p2  ;;  %p1906_p12 = scmp.lt.s32.totalorder %s2108_s14, 2 }
  0x31   : > { %p59_p11 = scmp.eq.s32.totalorder %s56_s26, 0  ;;  %s139_s23 = sand.u32 1, %s2096_s11  }
  0x32   : > { %s1577_s27 = sshll.u32 %s139_s23, 5  ;;  %s1602_s29 = sshll.u32 %s2104_s13, 9 }
  0x33   : > { %s2242_s28 = scalar_select %p59_p11, %s2096_s11, %s61_s16  }
  0x34   : > { %s2248_s4 = scalar_lea.hbm %s2460_s1, %s1602_s29  ;;  %s143_s18 = scalar_lea.vmem [#allocation5], %s1577_s27 }
  0x35   : > { %s151_s5 = sshll.u32 %s143_s18, 4  ;;  %p2254_p13 = pnand %p1906_p12, %p2227_p6  ;;  %s2250_s5 = int_to_ptr.vmem [resolvable:$true] %s151_s5 }
  0x36   : > { %s2258_s15 = scalar_lea.sflag [#allocation6], %s139_s23  ;;  %s1992_s16 = scalar_lea.hbm %s2248_s4, 512 }
  0x37   : > { %p1993_p0 = scmp.ne.s32.totalorder %s2248_s4, %s1992_s16  ;;  %p1994_p3 = pneg %p2254_p13 }
  0x38   : > { %s1997_s22 = scalar_lea.hbm %s2460_s1, 1024  ;;  %p1998_p9 = scmp.lt.u32.totalorder %s2248_s4, %s2460_s1 }
  0x39   : > { %p1995_p5 = pnand %p1994_p3, %p1993_p0  ;;  %p1999_p1 = scmp.lt.u32.totalorder %s1997_s22, %s1992_s16 }
  0x3a   : > { %p2001_p4 = scmp.lt.u32.totalorder %s1992_s16, %s2248_s4 }
  0x3b   : > { %p1996_p7 = pneg %p1995_p5  ;;  %p2000_p2 = por %p1999_p1, %p1998_p9 }
  0x3d   : > { %p2002_p6 = por %p2001_p4, %p2000_p2 }
  0x3f   : > { %p2003_p8 = pnand %p2002_p6, %p1996_p7 }
  0x41   : > { %2006 = shalt.err (!%p2003_p8)
}
  0x42   : > { %s2007_s23 = scalar_lea.vmem %s2250_s5, 512  ;;  %s2113_s3 = smov [#allocation5]  }
  0x43   : > { %p2008_p12 = scmp.ne.s32.totalorder %s2250_s5, %s2007_s23  ;;  %s2012_s18 = sshll.u32 %s2113_s3, 4  ;;  %s2013_s18 = int_to_ptr.vmem [resolvable:$false] %s2012_s18 }
  0x44   : > { %s2014_s26 = scalar_lea.vmem %s2013_s18, 1024  ;;  %p2015_p5 = scmp.lt.s32.totalorder %s2250_s5, %s2013_s18 }
  0x45   : > { %p2010_p11 = pnand %p2008_p12, %p1994_p3  ;;  %p2016_p9 = scmp.lt.s32.totalorder %s2014_s26, %s2007_s23 }
  0x47   : > { %p2011_p0 = pneg %p2010_p11  ;;  %p2017_p1 = por %p2016_p9, %p2015_p5 }
  0x49   : > { %p2018_p2 = pnand %p2017_p1, %p2011_p0 }
  0x4b   : > { %2021 = shalt.err (!%p2018_p2)
}
  0x4c   : > { %1900 = dma.hbm_to_vmem [thread:$0]  (!%p2254_p13), %s2248_s4, 512, %s2250_s5, %s2258_s15, %s2111_s6, %s2111_s6, %s2112_s7  }
  0x4d   : > { %p2476_p3 = scmp.ne.s32.totalorder %s2470_s21, 0 }
  0x4e   : > { %p2477_p7 = scmp.ne.s32.totalorder (!%p2476_p3), %s2466_s17, 0 }
  0x4f   : > { %163 = sbr.rel (%p2476_p3) target bundleno = 609 (0x261), region = 28 }
  0x56   : > { %2075 = dma.done.wait (%p2477_p7), [#allocation3], 256  }
  0x57   : > { %2077 = vsyncadd (%p2477_p7), [#allocation3], 4294967040  ;;  %s2296_s16 = sand.u32 1, %s2092_s10   ;;  %p2478_p4 = scmp.ne.s32.totalorder %s2468_s19, 0 }
  0x58   : > { %s1582_s8 = sshll.u32 %s2296_s16, 5  ;;  %s170_s27 = scalar_lea.sflag [#allocation6], %s2296_s16 }
  0x59   : > { %s173_s22 = scalar_lea.vmem [#allocation5], %s1582_s8 }
  0x5a   : > { %2079 = dma.done.wait (%p2478_p4), %s170_s27, 512  }
  0x5b   : > { %2081 = vsyncadd (%p2478_p4), %s170_s27, 4294966784  ;;  %vm202_vm0 = vcmask 130048   ;;  %v198_v0 = vld [vmem:[%s173_s22 + $0x10] sm:$0xff]  ;;  %v196_v1 = vld [vmem:[%s173_s22] sm:$0xff]  ;;  %s2114_s17 = smov 112   ;;  %s1583_s19 = sshll.u32 %s2296_s16, 7 }
  0x5c   : > { %v199_v2 = vld [vmem:[%s173_s22 + $0x18] sm:$0xff]  ;;  %833 = vrot.lane.b32.xlu1 %v198_v0, %s2114_s17  ;;  %v210_v3 = vsel %vm202_vm0, %v198_v0, 0  ;;  %829 = vrot.lane.b32.xlu0 %v196_v1, %s2114_s17  ;;  %v204_v4 = vsel %vm202_vm0, %v196_v1, 0  ;;  %v197_v6 = vld [vmem:[%s173_s22 + $0x8] sm:$0xff]  ;;  %v200_v7 = vld [vmem:[#allocation2] sm:$0xff]  ;;  %vm803_vm1 = vcmask 64512  }
  0x5d   : > { %v213_v5 = vsel %vm202_vm0, %v199_v2, 0  ;;  %v201_v8 = vld [vmem:[#allocation2 + $0x8] sm:$0xff]  ;;  %v2307_v9 = vand.u32 4294901760, %v210_v3  ;;  %v2309_v10 = vand.u32 4294901760, %v204_v4  ;;  %v207_v12 = vsel %vm202_vm0, %v197_v6, 0  ;;  %s2369_s21 = scalar_lea.vmem [#allocation7], %s1583_s19 }
  0x5e   : > { %v2311_v11 = vand.u32 4294901760, %v213_v5  ;;  %v2314_v13 = vand.u32 4294901760, %v207_v12  ;;  %v216_v14 = vand.u32 4294901760, %v200_v7  ;;  %v219_v15 = vand.u32 4294901760, %v201_v8  ;;  %s2115_s6 = smov 120   ;;  %s1604_s7 = sshll.u32 %s2100_s12, 11 }
  0x5f   : > { %v303_v16 = vsub.f32 %v210_v3, %v2307_v9  ;;  %v283_v17 = vsub.f32 %v204_v4, %v2309_v10  ;;  %s1475_s4 = sshll.u32 %s2369_s21, 4  ;;  %s2404_s29 = scalar_lea.hbm %s2461_s2, %s1604_s7  ;;  %s2406_s4 = int_to_ptr.vmem [resolvable:$true] %s1475_s4 }
  0x60   : > { %v313_v18 = vsub.f32 %v213_v5, %v2311_v11  ;;  %835 = vrot.lane.b32.xlu1 %v199_v2, %s2114_s17  ;;  %v293_v19 = vsub.f32 %v207_v12, %v2314_v13  ;;  %831 = vrot.lane.b32.xlu0 %v197_v6, %s2114_s17  ;;  %v2320_v20 = vpack.c.bf16 %v219_v15, %v216_v14  ;;  %s1460_s12 = scalar_lea.sflag [#allocation4], %s2296_s16  ;;  %s2022_s30 = scalar_lea.vmem %s2406_s4, 2048 }
  0x61   : > { %v324_v21 = vsub.f32 %v200_v7, %v216_v14  ;;  %v284_v22 = vand.u32 4294901760, %v283_v17  ;;  %v304_v23 = vand.u32 4294901760, %v303_v16  ;;  %v331_v25 = vsub.f32 %v201_v8, %v219_v15  ;;  %p2023_p13 = scmp.ne.s32.totalorder %s2406_s4, %s2022_s30  ;;  %s2116_s23 = smov [#allocation7]  }
  0x62   : > { %v314_v24 = vand.u32 4294901760, %v313_v18  ;;  %1798 = vmatprep.subr.bf16.mxu0 %v2320_v20  ;;  %v294_v26 = vand.u32 4294901760, %v293_v19  ;;  %1822 = vmatprep.subr.bf16.mxu1 %v2320_v20  ;;  %s2026_s3 = sshll.u32 %s2116_s23, 4  ;;  %s2027_s3 = int_to_ptr.vmem [resolvable:$false] %s2026_s3 }
  0x63   : > { %v325_v27 = vand.u32 4294901760, %v324_v21  ;;  %1800 = vmatpush3.bf16.msra.mxu0 %v2320_v20  ;;  %v285_v28 = vsub.f32 %v283_v17, %v284_v22  ;;  %v305_v29 = vsub.f32 %v303_v16, %v304_v23  ;;  %v332_v30 = vand.u32 4294901760, %v331_v25  ;;  %1824 = vmatpush3.bf16.msra.mxu1 %v2320_v20  ;;  %p2024_p6 = pnand %p2023_p13, %p2233_p10  ;;  %s2028_s18 = scalar_lea.vmem %s2027_s3, 4096 }
  0x64   : > { %v295_v31 = vsub.f32 %v293_v19, %v294_v26  ;;  %v315_v32 = vsub.f32 %v313_v18, %v314_v24  ;;  %v2328_v42 = vpack.c.bf16 %v331_v25, %v324_v21  ;;  %p2029_p12 = scmp.lt.s32.totalorder %s2406_s4, %s2027_s3  ;;  %p2030_p11 = scmp.lt.s32.totalorder %s2028_s18, %s2022_s30 }
  0x65   : > { %v326_v33 = vsub.f32 %v324_v21, %v325_v27  ;;  %v286_v34 = vand.u32 4294901760, %v285_v28  ;;  %v306_v35 = vand.u32 4294901760, %v305_v29  ;;  %v333_v36 = vsub.f32 %v331_v25, %v332_v30  ;;  %p2025_p8 = pneg %p2024_p6 }
  0x66   : > { %v296_v37 = vand.u32 4294901760, %v295_v31  ;;  %v316_v40 = vand.u32 4294901760, %v315_v32  ;;  %v2340_v43 = vpack.c.bf16 %v332_v30, %v325_v27  ;;  %p2031_p0 = por %p2030_p11, %p2029_p12 }
  0x67   : > { %v327_v38 = vand.u32 4294901760, %v326_v33  ;;  %1681 = vmatprep.mubr.f32.mxu0 %v286_v34  ;;  %v334_v39 = vand.u32 4294901760, %v333_v36 }
  0x68   : > { %1682 = vmatmul.mubr.f32.vlgmr.msra.gmra.mrb[0].mxu0 %v296_v37  ;;  %p2032_p5 = pnand %p2031_p0, %p2025_p8 }
  0x69   : > { %1684 = vmatprep.mubr.f32.mxu0 %v306_v35  ;;  %v2326_v41 = vpack.c.bf16 %v334_v39, %v327_v38 }
  0x6b   : > { %1802 = vmatprep.subr.bf16.mxu0 %v2326_v41  ;;  %1826 = vmatprep.subr.bf16.mxu1 %v2326_v41 }
  0x6c   : > { %1685 = vmatmul.mubr.f32.gmra.mrb[2].mxu0 %v316_v40 }
  0x6d   : > { %1804 = vmatpush3.bf16.msra.mxu0 %v2326_v41  ;;  %1691 = vmatprep.mubr.f32.mxu0 %v2309_v10 }
  0x6e   : > { %1806 = vmatprep.subr.bf16.mxu0 %v2328_v42 }
  0x70   : > { %1692 = vmatmul.mubr.f32.vlgmr.msra.gmra.mrb[0].mxu0 %v2314_v13 }
  0x71   : > { %1694 = vmatprep.mubr.f32.mxu0 %v2307_v9  ;;  %1808 = vmatpush3.bf16.msra.mxu0 %v2328_v42 }
  0x72   : > { %1810 = vmatprep.subr.bf16.mxu0 %v2320_v20 }
  0x74   : > { %1695 = vmatmul.mubr.f32.gmra.mrb[2].mxu0 %v2311_v11 }
  0x75   : > { %1701 = vmatprep.mubr.f32.mxu0 %v283_v17 }
  0x78   : > { %1702 = vmatmul.mubr.f32.vlgmr.msra.gmra.mrb[0].mxu0 %v293_v19 }
  0x79   : > { %1704 = vmatprep.mubr.f32.mxu0 %v303_v16  ;;  %1812 = vmatpush3.bf16.msra.mxu0 %v2320_v20 }
  0x7a   : > { %1814 = vmatprep.subr.bf16.mxu0 %v2340_v43 }
  0x7c   : > { %1705 = vmatmul.mubr.f32.gmra.mrb[2].mxu0 %v313_v18 }
  0x7d   : > { %1711 = vmatprep.mubr.f32.mxu0 %v284_v22 }
  0x80   : > { %1712 = vmatmul.mubr.f32.vlgmr.msra.gmra.mrb[0].mxu0 %v294_v26 }
  0x81   : > { %1714 = vmatprep.mubr.f32.mxu0 %v304_v23  ;;  %1816 = vmatpush3.bf16.msra.mxu0 %v2340_v43 }
  0x82   : > { %1818 = vmatprep.subr.bf16.mxu0 %v2320_v20 }
  0x84   : > { %1715 = vmatmul.mubr.f32.gmra.mrb[2].mxu0 %v314_v24 }
  0x85   : > { %1721 = vmatprep.mubr.f32.mxu0 %v2309_v10 }
  0x88   : > { %1722 = vmatmul.mubr.f32.vlgmr.msra.gmra.mrb[0].mxu0 %v2314_v13 }
  0x89   : > { %1724 = vmatprep.mubr.f32.mxu0 %v2307_v9  ;;  %1820 = vmatpush3.bf16.msra.mxu0 %v2320_v20 }
  0x8c   : > { %1725 = vmatmul.mubr.f32.gmra.mrb[2].mxu0 %v2311_v11 }
  0x8d   : > { %1731 = vmatprep.mubr.f32.mxu0 %v2309_v10 }
  0x90   : > { %1732 = vmatmul.mubr.f32.vlgmr.msra.gmra.mrb[0].mxu0 %v2314_v13 }
  0x91   : > { %1734 = vmatprep.mubr.f32.mxu0 %v2307_v9 }
  0x94   : > { %1735 = vmatmul.mubr.f32.gmra.mrb[2].mxu0 %v2311_v11 }
  0xce   : > { %v834_v44 = vpop.permute.xlu1 %833  ;;  %v830_v45 = vpop.permute.xlu0 %829 }
  0xcf   : > { %v841_v46 = vsel %vm202_vm0, %v834_v44, 0  ;;  %v837_v47 = vsel %vm202_vm0, %v830_v45, 0 }
  0xd0   : > { %v932_v48 = vand.u32 4294901760, %v841_v46  ;;  %v912_v49 = vand.u32 4294901760, %v837_v47 }
  0xd2   : > { %v933_v50 = vsub.f32 %v841_v46, %v932_v48  ;;  %v913_v51 = vsub.f32 %v837_v47, %v912_v49  ;;  %v836_v52 = vpop.permute.xlu1 %835  ;;  %v832_v53 = vpop.permute.xlu0 %831 }
  0xd3   : > { %v843_v54 = vsel %vm202_vm0, %v836_v52, 0  ;;  %v839_v55 = vsel %vm202_vm0, %v832_v53, 0 }
  0xd4   : > { %v942_v56 = vand.u32 4294901760, %v843_v54  ;;  %v922_v57 = vand.u32 4294901760, %v839_v55  ;;  %v914_v58 = vand.u32 4294901760, %v913_v51  ;;  %v934_v59 = vand.u32 4294901760, %v933_v50 }
  0xd6   : > { %v943_v60 = vsub.f32 %v843_v54, %v942_v56  ;;  %v923_v61 = vsub.f32 %v839_v55, %v922_v57  ;;  %v915_v62 = vsub.f32 %v913_v51, %v914_v58  ;;  %v935_v2 = vsub.f32 %v933_v50, %v934_v59 }
  0xd8   : > { %v944_v63 = vand.u32 4294901760, %v943_v60  ;;  %v924_v0 = vand.u32 4294901760, %v923_v61  ;;  %v916_v1 = vand.u32 4294901760, %v915_v62  ;;  %v936_v6 = vand.u32 4294901760, %v935_v2 }
  0xda   : > { %1741 = vmatprep.mubr.f32.mxu1 %v916_v1  ;;  %v925_v3 = vsub.f32 %v923_v61, %v924_v0  ;;  %v945_v5 = vsub.f32 %v943_v60, %v944_v63 }
  0xdc   : > { %v926_v4 = vand.u32 4294901760, %v925_v3  ;;  %v946_v7 = vand.u32 4294901760, %v945_v5 }
  0xde   : > { %1742 = vmatmul.mubr.f32.vlgmr.msra.gmra.mrb[0].mxu1 %v926_v4 }
  0xdf   : > { %1828 = vmatpush3.bf16.msra.mxu1 %v2326_v41  ;;  %1744 = vmatprep.mubr.f32.mxu1 %v936_v6 }
  0xe0   : > { %1830 = vmatprep.subr.bf16.mxu1 %v2328_v42 }
  0xe2   : > { %1745 = vmatmul.mubr.f32.gmra.mrb[2].mxu1 %v946_v7 }
  0xe3   : > { %1751 = vmatprep.mubr.f32.mxu1 %v912_v49 }
  0xe6   : > { %1752 = vmatmul.mubr.f32.vlgmr.msra.gmra.mrb[0].mxu1 %v922_v57 }
  0xe7   : > { %1832 = vmatpush3.bf16.msra.mxu1 %v2328_v42  ;;  %1754 = vmatprep.mubr.f32.mxu1 %v932_v48 }
  0xe8   : > { %1834 = vmatprep.subr.bf16.mxu1 %v2320_v20 }
  0xea   : > { %1755 = vmatmul.mubr.f32.gmra.mrb[2].mxu1 %v942_v56 }
  0xeb   : > { %1761 = vmatprep.mubr.f32.mxu1 %v913_v51 }
  0xee   : > { %1762 = vmatmul.mubr.f32.vlgmr.msra.gmra.mrb[0].mxu1 %v923_v61 }
  0xef   : > { %1836 = vmatpush3.bf16.msra.mxu1 %v2320_v20  ;;  %1764 = vmatprep.mubr.f32.mxu1 %v933_v50 }
  0xf0   : > { %1838 = vmatprep.subr.bf16.mxu1 %v2340_v43 }
  0xf2   : > { %1765 = vmatmul.mubr.f32.gmra.mrb[2].mxu1 %v943_v60 }
  0xf3   : > { %1771 = vmatprep.mubr.f32.mxu1 %v914_v58 }
  0xf6   : > { %1772 = vmatmul.mubr.f32.vlgmr.msra.gmra.mrb[0].mxu1 %v924_v0 }
  0xf7   : > { %1840 = vmatpush3.bf16.msra.mxu1 %v2340_v43  ;;  %1774 = vmatprep.mubr.f32.mxu1 %v934_v59 }
  0xf8   : > { %1842 = vmatprep.subr.bf16.mxu1 %v2320_v20 }
  0xfa   : > { %1775 = vmatmul.mubr.f32.gmra.mrb[2].mxu1 %v944_v63 }
  0xfb   : > { %1781 = vmatprep.mubr.f32.mxu1 %v912_v49 }
  0xfe   : > { %1782 = vmatmul.mubr.f32.vlgmr.msra.gmra.mrb[0].mxu1 %v922_v57 }
  0xff   : > { %1844 = vmatpush3.bf16.msra.mxu1 %v2320_v20  ;;  %1784 = vmatprep.mubr.f32.mxu1 %v932_v48 }
 0x102   : > { %1785 = vmatmul.mubr.f32.gmra.mrb[2].mxu1 %v942_v56 }
 0x103   : > { %1791 = vmatprep.mubr.f32.mxu1 %v912_v49 }
 0x106   : > { %1792 = vmatmul.mubr.f32.vlgmr.msra.gmra.mrb[0].mxu1 %v922_v57 }
 0x107   : > { %1794 = vmatprep.mubr.f32.mxu1 %v932_v48 }
 0x10a   : > { %1795 = vmatmul.mubr.f32.gmra.mrb[2].mxu1 %v942_v56 }
 0x163   : > { %v1733_v8 = vpop.f32.mrb[0].mxu0 }
 0x164   : > { %805 = vst.msk [vmem:[%s2369_s21 + $0x20] sm:$0xff] %vm803_vm1, %v1733_v8  ;;  %v781_v9 = vpop.f32.mrb[1].mxu0  ;;  %814 = vrot.lane.b32.xlu1 %v1733_v8, %s2115_s6 }
 0x165   : > { %804 = vst.msk [vmem:[%s2369_s21] sm:$0xff] %vm803_vm1, %v781_v9  ;;  %812 = vrot.lane.b32.xlu0 %v781_v9, %s2115_s6 }
 0x167   : > { %v1736_v10 = vpop.f32.mrb[2].mxu0 }
 0x168   : > { %807 = vst.msk [vmem:[%s2369_s21 + $0x60] sm:$0xff] %vm803_vm1, %v1736_v10  ;;  %v793_v11 = vpop.f32.mrb[3].mxu0  ;;  %818 = vrot.lane.b32.xlu1 %v1736_v10, %s2115_s6 }
 0x169   : > { %806 = vst.msk [vmem:[%s2369_s21 + $0x40] sm:$0xff] %vm803_vm1, %v793_v11  ;;  %816 = vrot.lane.b32.xlu0 %v793_v11, %s2115_s6 }
 0x1d6   : > { %v815_v12 = vpop.permute.xlu1 %814 }
 0x1d7   : > { %1585 = vst.msk [vmem:[%s2369_s21 + $0x28] sm:$0xff] %vm803_vm1, %v815_v12  ;;  %v813_v13 = vpop.permute.xlu0 %812 }
 0x1d8   : > { %1584 = vst.msk [vmem:[%s2369_s21 + $0x8] sm:$0xff] %vm803_vm1, %v813_v13 }
 0x1d9   : > { %v1793_v14 = vpop.f32.mrb[0].mxu1 }
 0x1da   : > { %1589 = vst.msk [vmem:[%s2369_s21 + $0x30] sm:$0xff] %vm803_vm1, %v1793_v14  ;;  %v1411_v15 = vpop.f32.mrb[1].mxu1  ;;  %1444 = vrot.lane.b32.xlu1 %v1793_v14, %s2115_s6  ;;  %v819_v16 = vpop.permute.xlu1 %818 }
 0x1db   : > { %1588 = vst.msk [vmem:[%s2369_s21 + $0x10] sm:$0xff] %vm803_vm1, %v1411_v15  ;;  %1442 = vrot.lane.b32.xlu0 %v1411_v15, %s2115_s6  ;;  %1587 = vst.msk [vmem:[%s2369_s21 + $0x68] sm:$0xff] %vm803_vm1, %v819_v16  ;;  %v817_v17 = vpop.permute.xlu0 %816 }
 0x1dc   : > { %1586 = vst.msk [vmem:[%s2369_s21 + $0x48] sm:$0xff] %vm803_vm1, %v817_v17 }
 0x1dd   : > { %v1796_v18 = vpop.f32.mrb[2].mxu1 }
 0x1de   : > { %1591 = vst.msk [vmem:[%s2369_s21 + $0x70] sm:$0xff] %vm803_vm1, %v1796_v18  ;;  %v1423_v19 = vpop.f32.mrb[3].mxu1  ;;  %1448 = vrot.lane.b32.xlu1 %v1796_v18, %s2115_s6 }
 0x1df   : > { %1590 = vst.msk [vmem:[%s2369_s21 + $0x50] sm:$0xff] %vm803_vm1, %v1423_v19  ;;  %1446 = vrot.lane.b32.xlu0 %v1423_v19, %s2115_s6 }
 0x24c   : > { %v1445_v20 = vpop.permute.xlu1 %1444 }
 0x24d   : > { %1593 = vst.msk [vmem:[%s2369_s21 + $0x38] sm:$0xff] %vm803_vm1, %v1445_v20  ;;  %v1443_v21 = vpop.permute.xlu0 %1442 }
 0x24e   : > { %1592 = vst.msk [vmem:[%s2369_s21 + $0x18] sm:$0xff] %vm803_vm1, %v1443_v21 }
 0x250   : > { %v1449_v22 = vpop.permute.xlu1 %1448 }
 0x251   : > { %1595 = vst.msk [vmem:[%s2369_s21 + $0x78] sm:$0xff] %vm803_vm1, %v1449_v22  ;;  %v1447_v23 = vpop.permute.xlu0 %1446 }
 0x252   : > { %1594 = vst.msk [vmem:[%s2369_s21 + $0x58] sm:$0xff] %vm803_vm1, %v1447_v23 }
 0x253   : > { %2035 = shalt.err (!%p2032_p5)
}
 0x254   : > { %s2036_s26 = scalar_lea.hbm %s2404_s29, 2048  ;;  %s2040_s22 = scalar_lea.hbm %s2461_s2, 4096 }
 0x255   : > { %p2037_p9 = scmp.ne.s32.totalorder %s2404_s29, %s2036_s26  ;;  %p2041_p3 = scmp.lt.u32.totalorder %s2404_s29, %s2461_s2 }
 0x256   : > { %p2042_p7 = scmp.lt.u32.totalorder %s2040_s22, %s2036_s26  ;;  %p2044_p13 = scmp.lt.u32.totalorder %s2036_s26, %s2404_s29 }
 0x257   : > { %p2038_p1 = pnand %p2037_p9, %p2233_p10 }
 0x258   : > { %p2043_p4 = por %p2042_p7, %p2041_p3 }
 0x259   : > { %p2039_p2 = pneg %p2038_p1 }
 0x25a   : > { %p2045_p6 = por %p2044_p13, %p2043_p4 }
 0x25c   : > { %p2046_p8 = pnand %p2045_p6, %p2039_p2 }
 0x25e   : > { %2049 = shalt.err (!%p2046_p8)
}
 0x25f   : > { %s2117_s21 = smov 128   ;;  %s2118_s6 = smov 8  }
 0x260   : > { %1891 = dma.vmem_to_hbm [thread:$0]  (%p2233_p10), %s2406_s4, 2048, %s2404_s29, %s1460_s12, %s2117_s21, %s2117_s21, %s2118_s6  }
 0x261 PF: > { %s1490_s7 = sand.u32 1, %s2088_s9   ;;  %p2479_p12 = scmp.ne.s32.totalorder %s2469_s20, 0 }
 0x262   : > { %p2480_p11 = scmp.ge.s32.totalorder %s2108_s14, 2  ;;  %s1491_s5 = scalar_lea.sflag [#allocation4], %s1490_s7 }
 0x264   : > { %p1902_p0 = pnand %p2480_p11, %p2479_p12 }
 0x266   : > { %2083 = dma.done.wait (!%p1902_p0), %s1491_s5, 2048  }
 0x267   : > { %2085 = vsyncadd (!%p1902_p0), %s1491_s5, 4294965248  ;;  %s19_s14 = sadd.s32 1, %s2108_s14   ;;  %s2481_s9 = smov %s2092_s10 }
 0x268   : > { %p16_p5 = scmp.ge.s32.totalorder %s19_s14, 4   ;;  %s2482_s10 = smov %s2096_s11 }
 0x269   : > { %s2483_s11 = smov %s2242_s28  ;;  %s2484_s12 = smov %s2104_s13 }
 0x26a   : > { %s2485_s13 = smov %s2487_s25  ;;  %18 = sbr.rel (!%p16_p5) target bundleno = 7 (0x7), region = 81 }
 0x271   :  { %1496 = vsyncpa [#allocation3], 1 }
 0x272   :  { %1498 = vsyncpa [#allocation3 + $0x1], 1 }
 0x273   :  { %1499 = vsyncpa [#allocation6], 1 }
 0x274   :  { %1501 = vsyncpa [#allocation6 + $0x1], 1 }
 0x275   :  { %1502 = vsyncpa [#allocation4], 1 }
 0x276   :  { %1504 = vsyncpa [#allocation4 + $0x1], 1 }

</bundles_post_ra>
